<compile_context>
chip_gen: v5e
topology: v5e:2x2
jax: 0.10.0
libtpu: 0.0.40
codegen_flags: <defaults>
</compile_context>

<pallas_src>
import jax
import jax.numpy as jnp
import numpy as np
from jax.experimental import pallas as pl
from jax.experimental.pallas import tpu as pltpu

# ---- model hyper-parameters (match BatchNegModel defaults where sensible) ----
MARGIN = 0.2
SCALE = 20.0
PAD_TOKEN_ID = 0

B = 8          # batch
S = 8          # sequence length
H = 32         # bert hidden_size (logical)
E = 16         # output_emb_size (logical)
VOCAB = 100
EPS = 1e-12    # NOTE: torch F.normalize clamps the norm at eps; we add eps to sum-sq
               # before rsqrt.  Identical in practice for non-degenerate rows.

LANE = 128
H_PAD = ((H + LANE - 1) // LANE) * LANE   # 128
E_PAD = ((E + LANE - 1) // LANE) * LANE   # 128


def batch_neg_kernel(pooled_ref, pair_ref, w_ref, b_ref, loss_ref):
    """Computes BatchNegModel.forward (mean_loss=False) given pooled BERT outputs.

    pooled_ref : (B, H_PAD)   pooled_output for the query batch      (VMEM, f32)
    pair_ref   : (B, H_PAD)   pooled_output for the pair batch       (VMEM, f32)
    w_ref      : (H_PAD, E_PAD) emb_reduce_linear weight (x @ W)     (VMEM, f32)
    b_ref      : (1, E_PAD)   emb_reduce_linear bias                 (VMEM, f32)
    loss_ref   : (1, 1)       scalar cross-entropy loss              (SMEM, f32)
    """
    # Fuse query + pair pooled outputs into one MXU operand in-register
    # (8-row f32 tiles -> clean sublane-boundary concat, no HBM traffic).
    stacked = jnp.concatenate([pooled_ref[...], pair_ref[...]], axis=0)   # (2B, H_PAD) f32

    # bf16 operands -> full-rate MXU; f32 accumulation.
    stacked_bf = stacked.astype(jnp.bfloat16)
    w_bf = w_ref[...].astype(jnp.bfloat16)

    # emb_reduce_linear for both batches with one fused matmul + one bias broadcast.
    proj = jnp.dot(stacked_bf, w_bf, preferred_element_type=jnp.float32)  # (2B, E_PAD)
    proj = proj + b_ref[...]

    # F.normalize(emb, p=2, dim=-1) in f32 (padded E columns are exactly zero, so the
    # norm is unbiased by the padding).
    inv_norm = jax.lax.rsqrt(jnp.sum(proj * proj, axis=-1, keepdims=True) + EPS)
    proj = proj * inv_norm

    emb_bf = proj[:B].astype(jnp.bfloat16)       # (B, E_PAD)
    pair_bf = proj[B:].astype(jnp.bfloat16)      # (B, E_PAD)

    # similarity = emb @ pair_emb.T  (NT contraction on the feature axis; transpose is
    # folded into the MXU operand feed rather than a separate XLU vxpose).
    sim = jax.lax.dot_general(
        emb_bf, pair_bf, (((1,), (1,)), ((), ())),
        preferred_element_type=jnp.float32)      # (B, B) f32

    # Target (diagonal) logit computed directly as a rowwise dot of the same bf16
    # operands: one elementwise mul + lane reduce, no full-width select over the
    # B x B block (and it stays tile-local in a future column-blocked version).
    target_sim = jnp.sum(emb_bf.astype(jnp.float32) * pair_bf.astype(jnp.float32),
                         axis=-1, keepdims=True)                          # (B, 1)

    # similarity -= diag(margin); similarity *= scale
    row = jax.lax.broadcasted_iota(jnp.int32, sim.shape, 0)
    col = jax.lax.broadcasted_iota(jnp.int32, sim.shape, 1)
    diag_mask = row == col
    logits = jnp.where(diag_mask, sim - MARGIN, sim) * SCALE              # (B, B)
    target_logit = (target_sim - MARGIN) * SCALE                          # (B, 1)

    # cross_entropy(logits, labels=arange(B)) with mean reduction (f32 softmax path).
    m = jnp.max(logits, axis=-1, keepdims=True)                           # (B, 1)
    lse = m + jnp.log(jnp.sum(jnp.exp(logits - m), axis=-1, keepdims=True))
    per_row_loss = lse - target_logit                                     # (B, 1)

    # scalar loss -> SMEM (avoids a masked partial vst into a padded VMEM tile)
    loss_ref[0, 0] = jnp.sum(per_row_loss) * (1.0 / B)


def _pad_last(x, target):
    pad = target - x.shape[-1]
    if pad == 0:
        return x
    return jnp.pad(x, [(0, 0)] * (x.ndim - 1) + [(0, pad)])


def batch_neg_loss(pooled, pair_pooled, w, bias):
    # One-time lane alignment of H and E to 128 with exact zeros.  (Real BERT H=768 is
    # already a lane multiple, so only the parameter pad on E would remain.)
    pooled_p = _pad_last(pooled, H_PAD)                                    # (B, H_PAD)
    pair_p = _pad_last(pair_pooled, H_PAD)                                 # (B, H_PAD)
    w_p = _pad_last(jnp.pad(w, ((0, H_PAD - w.shape[0]), (0, 0))), E_PAD)  # (H_PAD, E_PAD)
    bias_p = _pad_last(bias, E_PAD)                                        # (1, E_PAD)

    out = pl.pallas_call(
        batch_neg_kernel,
        out_shape=jax.ShapeDtypeStruct((1, 1), jnp.float32),
        in_specs=[
            pl.BlockSpec(memory_space=pltpu.MemorySpace.VMEM),
            pl.BlockSpec(memory_space=pltpu.MemorySpace.VMEM),
            pl.BlockSpec(memory_space=pltpu.MemorySpace.VMEM),
            pl.BlockSpec(memory_space=pltpu.MemorySpace.VMEM),
        ],
        out_specs=pl.BlockSpec(memory_space=pltpu.MemorySpace.SMEM),
    )(pooled_p, pair_p, w_p, bias_p)
    return out[0, 0]


# ---------------- surrogate "BERT" encoder (plain-JAX glue) ----------------
def surrogate_pooled_output(input_ids, emb_table, pooler_w, pooler_b):
    # embedding lookup -> take [CLS]-position vector -> tanh(dense(.)) like BERT's pooler
    seq_out = emb_table[input_ids]                 # (B, S, H)
    cls = seq_out[:, 0, :]                         # (B, H)
    return jnp.tanh(cls @ pooler_w + pooler_b)     # (B, H)


def reference_loss(pooled, pair_pooled, w, bias):
    """Pure-JAX f32 reference mirroring BatchNegModel.forward with mean_loss=False
    (single F.cross_entropy, whose default reduction is the mean over the batch)."""
    emb = pooled @ w + bias
    pair_emb = pair_pooled @ w + bias
    emb = emb / jnp.linalg.norm(emb, axis=-1, keepdims=True)
    pair_emb = pair_emb / jnp.linalg.norm(pair_emb, axis=-1, keepdims=True)
    sim = emb @ pair_emb.T
    sim = sim - jnp.diag(jnp.full((B,), MARGIN, sim.dtype))
    sim = sim * SCALE
    labels = jnp.arange(B)
    logp = jax.nn.log_softmax(sim, axis=-1)
    return -jnp.mean(logp[jnp.arange(B), labels])


if __name__ == "__main__":
    key = jax.random.PRNGKey(0)
    k_ids, k_pids, k_emb, k_pw, k_pb, k_w, k_b = jax.random.split(key, 7)

    # deterministic token ids (avoid pad id 0)
    input_ids = jax.random.randint(k_ids, (B, S), 1, VOCAB, dtype=jnp.int32)
    pair_input_ids = jax.random.randint(k_pids, (B, S), 1, VOCAB, dtype=jnp.int32)

    # deterministic parameters
    emb_table = jax.random.normal(k_emb, (VOCAB, H), jnp.float32) * 0.1
    pooler_w = jax.random.normal(k_pw, (H, H), jnp.float32) * 0.1
    pooler_b = jax.random.normal(k_pb, (H,), jnp.float32) * 0.01
    reduce_w = jax.random.normal(k_w, (H, E), jnp.float32) * 0.1   # emb_reduce_linear.weight.T
    reduce_b = (jax.random.normal(k_b, (E,), jnp.float32) * 0.01).reshape(1, E)

    # glue: surrogate bert pooled outputs
    pooled = surrogate_pooled_output(input_ids, emb_table, pooler_w, pooler_b)
    pair_pooled = surrogate_pooled_output(pair_input_ids, emb_table, pooler_w, pooler_b)

    loss = batch_neg_loss(pooled, pair_pooled, reduce_w, reduce_b)
    loss = jax.block_until_ready(loss)

    # f32 reference; kernel uses bf16 MXU operands (f32 accumulate), so allow a small
    # mixed-precision tolerance.
    ref = reference_loss(pooled, pair_pooled, reduce_w, reduce_b)
    assert np.isfinite(float(loss))
    assert np.allclose(float(loss), float(ref), rtol=5e-2, atol=5e-2), (loss, ref)

    print("KERNEL_OK")
</pallas_src>

<mosaic_0001>
module attributes {stable_mosaic.version = 11 : i64} {
  func.func @batch_neg_kernel(%arg0: memref<8x128xf32, #tpu.memory_space<vmem>>, %arg1: memref<8x128xf32, #tpu.memory_space<vmem>>, %arg2: memref<128x128xf32, #tpu.memory_space<vmem>>, %arg3: memref<1x128xf32, #tpu.memory_space<vmem>>, %arg4: memref<1x1xf32, #tpu.memory_space<smem>>) attributes {dimension_semantics = [], scalar_prefetch = 0 : i64, scratch_operands = 0 : i64, tpu.core_type = #tpu.core_type<tc>} {
    %c0 = arith.constant 0 : index
    %c0_0 = arith.constant 0 : index
    %0 = vector.load %arg0[%c0, %c0_0] : memref<8x128xf32, #tpu.memory_space<vmem>>, vector<8x128xf32>
    %c0_1 = arith.constant 0 : index
    %c0_2 = arith.constant 0 : index
    %1 = vector.load %arg1[%c0_1, %c0_2] : memref<8x128xf32, #tpu.memory_space<vmem>>, vector<8x128xf32>
    %2 = tpu.concatenate %0, %1 in 0 : vector<8x128xf32>, vector<8x128xf32> -> vector<16x128xf32>
    %3 = arith.truncf %2 : vector<16x128xf32> to vector<16x128xbf16>
    %c0_3 = arith.constant 0 : index
    %c0_4 = arith.constant 0 : index
    %4 = vector.load %arg2[%c0_3, %c0_4] : memref<128x128xf32, #tpu.memory_space<vmem>>, vector<128x128xf32>
    %5 = arith.truncf %4 : vector<128x128xf32> to vector<128x128xbf16>
    %cst = arith.constant dense<0.000000e+00> : vector<16x128xf32>
    %6 = tpu.matmul %3, %5, %cst {dimension_numbers = #tpu.dot_dimension_numbers<[1], [0], [0], [1], [0, 0, 1, 1], [], []>} : vector<16x128xbf16>, vector<128x128xbf16>, vector<16x128xf32> -> vector<16x128xf32>
    %c0_5 = arith.constant 0 : index
    %c0_6 = arith.constant 0 : index
    %7 = vector.load %arg3[%c0_5, %c0_6] : memref<1x128xf32, #tpu.memory_space<vmem>>, vector<1x128xf32>
    %8 = vector.broadcast %7 : vector<1x128xf32> to vector<16x128xf32>
    %9 = arith.addf %6, %8 : vector<16x128xf32>
    %10 = arith.mulf %9, %9 : vector<16x128xf32>
    %cst_7 = arith.constant dense<0.000000e+00> : vector<16xf32>
    %11 = vector.multi_reduction <add>, %10, %cst_7 [1] : vector<16x128xf32> to vector<16xf32>
    %12 = vector.shape_cast %11 : vector<16xf32> to vector<16x1xf32>
    %cst_8 = arith.constant 9.99999996E-13 : f32
    %13 = vector.broadcast %cst_8 : f32 to vector<16x1xf32>
    %14 = arith.addf %12, %13 : vector<16x1xf32>
    %15 = math.rsqrt %14 : vector<16x1xf32>
    %16 = vector.broadcast %15 : vector<16x1xf32> to vector<16x128xf32>
    %17 = arith.mulf %9, %16 : vector<16x128xf32>
    %18 = vector.extract_strided_slice %17 {offsets = [0, 0], sizes = [8, 128], strides = [1, 1]} : vector<16x128xf32> to vector<8x128xf32>
    %19 = arith.truncf %18 : vector<8x128xf32> to vector<8x128xbf16>
    %20 = vector.extract_strided_slice %17 {offsets = [8, 0], sizes = [8, 128], strides = [1, 1]} : vector<16x128xf32> to vector<8x128xf32>
    %21 = arith.truncf %20 : vector<8x128xf32> to vector<8x128xbf16>
    %cst_9 = arith.constant dense<0.000000e+00> : vector<8x8xf32>
    %22 = tpu.matmul %19, %21, %cst_9 {dimension_numbers = #tpu.dot_dimension_numbers<[1], [1], [0], [0], [0, 0, 1, 0], [], []>} : vector<8x128xbf16>, vector<8x128xbf16>, vector<8x8xf32> -> vector<8x8xf32>
    %23 = arith.extf %19 : vector<8x128xbf16> to vector<8x128xf32>
    %24 = arith.extf %21 : vector<8x128xbf16> to vector<8x128xf32>
    %25 = arith.mulf %23, %24 : vector<8x128xf32>
    %cst_10 = arith.constant dense<0.000000e+00> : vector<8xf32>
    %26 = vector.multi_reduction <add>, %25, %cst_10 [1] : vector<8x128xf32> to vector<8xf32>
    %27 = vector.shape_cast %26 : vector<8xf32> to vector<8x1xf32>
    %28 = tpu.iota {dimensions = array<i32: 0>} : vector<8x8xi32>
    %29 = tpu.iota {dimensions = array<i32: 1>} : vector<8x8xi32>
    %30 = arith.cmpi eq, %28, %29 : vector<8x8xi32>
    %cst_11 = arith.constant 2.000000e-01 : f32
    %31 = vector.broadcast %cst_11 : f32 to vector<8x8xf32>
    %32 = arith.subf %22, %31 : vector<8x8xf32>
    %33 = arith.select %30, %32, %22 : vector<8x8xi1>, vector<8x8xf32>
    %cst_12 = arith.constant 2.000000e+01 : f32
    %34 = vector.broadcast %cst_12 : f32 to vector<8x8xf32>
    %35 = arith.mulf %33, %34 : vector<8x8xf32>
    %cst_13 = arith.constant 2.000000e-01 : f32
    %36 = vector.broadcast %cst_13 : f32 to vector<8x1xf32>
    %37 = arith.subf %27, %36 : vector<8x1xf32>
    %cst_14 = arith.constant 2.000000e+01 : f32
    %38 = vector.broadcast %cst_14 : f32 to vector<8x1xf32>
    %39 = arith.mulf %37, %38 : vector<8x1xf32>
    %cst_15 = arith.constant dense<0xFF800000> : vector<8xf32>
    %40 = vector.multi_reduction <maximumf>, %35, %cst_15 [1] : vector<8x8xf32> to vector<8xf32>
    %41 = vector.shape_cast %40 : vector<8xf32> to vector<8x1xf32>
    %42 = vector.broadcast %41 : vector<8x1xf32> to vector<8x8xf32>
    %43 = arith.subf %35, %42 : vector<8x8xf32>
    %44 = math.exp %43 : vector<8x8xf32>
    %cst_16 = arith.constant dense<0.000000e+00> : vector<8xf32>
    %45 = vector.multi_reduction <add>, %44, %cst_16 [1] : vector<8x8xf32> to vector<8xf32>
    %46 = vector.shape_cast %45 : vector<8xf32> to vector<8x1xf32>
    %47 = math.log %46 : vector<8x1xf32>
    %48 = arith.addf %41, %47 : vector<8x1xf32>
    %49 = arith.subf %48, %39 : vector<8x1xf32>
    %50 = vector.shape_cast %49 : vector<8x1xf32> to vector<1x8x1xf32>
    %cst_17 = arith.constant dense<0.000000e+00> : vector<1xf32>
    %51 = vector.multi_reduction <add>, %50, %cst_17 [1, 2] : vector<1x8x1xf32> to vector<1xf32>
    %52 = vector.shape_cast %51 : vector<1xf32> to vector<1x1x1xf32>
    %53 = vector.extract %52[0, 0, 0] : f32 from vector<1x1x1xf32>
    %cst_18 = arith.constant 1.250000e-01 : f32
    %54 = arith.mulf %53, %cst_18 : f32
    %c0_19 = arith.constant 0 : index
    %c0_20 = arith.constant 0 : index
    %55 = memref.load %arg4[%c0_19, %c0_20] : memref<1x1xf32, #tpu.memory_space<smem>>
    memref.store %54, %arg4[%c0_19, %c0_20] : memref<1x1xf32, #tpu.memory_space<smem>>
    return
  }
}

</mosaic_0001>

<bundles_post_ra>
// kernel: tpu_custom_call.1
= control target key start
LH: loop header
LB: loop body
LE: loop exit
PB: predicated region body
PF: predicated region fallthrough
CT: control target
= control target key end

     0   :  { %9 = vsyncpa [#allocation3], 0  ;;  %s367_s0 = inlined_call_operand.hbm [shape: f32[8,128], index: 0, kind: input, shape index: {}]   ;;  %s368_s1 = inlined_call_operand.hbm [shape: f32[8,128], index: 1, kind: input, shape index: {}]   ;;  %s369_s2 = inlined_call_operand.hbm [shape: f32[128,128], index: 2, kind: input, shape index: {}]   ;;  %s370_s3 = inlined_call_operand.vmem [shape: f32[1,128], index: 3, kind: input, shape index: {}]   ;;  %s371_s4 = inlined_call_operand.hbm [shape: f32[1,1], index: 4, kind: output, shape index: {}]  }
   0x1   :  { %10 = vsyncpa [#allocation6], 0  ;;  %s28_s17 = sshll.u32 %s368_s1, 4  ;;  %s29_s17 = int_to_ptr.hbm [resolvable:$true] %s28_s17 }
   0x2   :  { %11 = vsyncpa [#allocation4], 0  ;;  %s321_s18 = smov [#allocation5]   ;;  %s17_s22 = sshll.u32 %s367_s0, 4  ;;  %s18_s22 = int_to_ptr.hbm [resolvable:$true] %s17_s22 }
   0x3   :  { %s30_s19 = sshll.u32 %s321_s18, 4  ;;  %s322_s23 = smov [#allocation2]   ;;  %s31_s19 = int_to_ptr.vmem [resolvable:$true] %s30_s19 }
   0x4   :  { %33 = dma.hbm_to_vmem [thread:$0]  %s29_s17, 128, %s31_s19, [#allocation6]  }
   0x5   :  { %s19_s24 = sshll.u32 %s322_s23, 4  ;;  %s38_s27 = sshll.u32 %s369_s2, 4  ;;  %s20_s24 = int_to_ptr.vmem [resolvable:$true] %s19_s24  ;;  %s39_s27 = int_to_ptr.hbm [resolvable:$true] %s38_s27 }
   0x6   :  { %22 = dma.hbm_to_vmem [thread:$0]  %s18_s22, 128, %s20_s24, [#allocation3]  }
   0x7   :  { %s323_s1 = smov [#allocation7]   ;;  %s324_s29 = smov 128  }
   0x8   :  { %s40_s28 = sshll.u32 %s323_s1, 4  ;;  %s325_s30 = smov 8   ;;  %s41_s28 = int_to_ptr.vmem [resolvable:$true] %s40_s28 }
   0x9   :  { %46 = dma.hbm_to_vmem [thread:$0]  %s39_s27, 2048, %s41_s28, [#allocation6], %s324_s29, %s324_s29, %s325_s30  }
   0xa   :  { %315 = dma.done.wait [#allocation3], 128  }
   0xb   :  { %316 = vsyncadd [#allocation3], 4294967168 }
   0xc   :  { %317 = dma.done.wait [#allocation6], 2176  }
   0xd   :  { %318 = vsyncadd [#allocation6], 4294965120  ;;  %v79_v0 = vld [vmem:[#allocation7 + $0x70] sm:$0xff]  ;;  %v80_v1 = vld [vmem:[#allocation7 + $0x78] sm:$0xff]  ;;  %v157_v59 = vlaneseq  ;;  %vm167_vm7 = vcmask 64512   ;;  %vm181_vm8 = vcmask 7168  }
   0xe   :  { %v77_v2 = vld [vmem:[#allocation7 + $0x60] sm:$0xff]  ;;  %v88_v3 = vpack.c.bf16 %v80_v1, %v79_v0  ;;  %v78_v4 = vld [vmem:[#allocation7 + $0x68] sm:$0xff]  ;;  %v75_v6 = vld [vmem:[#allocation7 + $0x50] sm:$0xff]  ;;  %s200_s6 = sshll.u32 %s371_s4, 4  ;;  %s326_s9 = smov [#allocation8]   ;;  %s201_s6 = int_to_ptr.hbm [resolvable:$true] %s200_s6 }
   0xf   :  { %v87_v5 = vpack.c.bf16 %v78_v4, %v77_v2  ;;  %v76_v7 = vld [vmem:[#allocation7 + $0x58] sm:$0xff]  ;;  %v73_v9 = vld [vmem:[#allocation7 + $0x40] sm:$0xff]  ;;  %v74_v10 = vld [vmem:[#allocation7 + $0x48] sm:$0xff]  ;;  %v158_v60 = vshrl.u32 %v157_v59, 7  ;;  %v160_v61 = vand.u32 127, %v157_v59 }
  0x10   :  { %93 = vmatpush.bf16.msra.mxu0 %v88_v3  ;;  %v86_v8 = vpack.c.bf16 %v76_v7, %v75_v6  ;;  %v85_v11 = vpack.c.bf16 %v74_v10, %v73_v9  ;;  %v71_v12 = vld [vmem:[#allocation7 + $0x30] sm:$0xff]  ;;  %v72_v13 = vld [vmem:[#allocation7 + $0x38] sm:$0xff]  ;;  %v69_v15 = vld [vmem:[#allocation7 + $0x20] sm:$0xff] }
  0x11   :  { %v84_v14 = vpack.c.bf16 %v72_v13, %v71_v12  ;;  %v70_v16 = vld [vmem:[#allocation7 + $0x28] sm:$0xff]  ;;  %v67_v18 = vld [vmem:[#allocation7 + $0x10] sm:$0xff]  ;;  %v68_v19 = vld [vmem:[#allocation7 + $0x18] sm:$0xff]  ;;  %vm161_vm6 = vcmp.eq.s32.totalorder %v158_v60, %v160_v61 }
  0x12   :  { %v83_v17 = vpack.c.bf16 %v70_v16, %v69_v15  ;;  %v82_v20 = vpack.c.bf16 %v68_v19, %v67_v18  ;;  %v65_v21 = vld [vmem:[#allocation7] sm:$0xff]  ;;  %v66_v22 = vld [vmem:[#allocation7 + $0x8] sm:$0xff]  ;;  %v62_v24 = vld [vmem:[#allocation2] sm:$0xff] }
  0x13   :  { %v81_v23 = vpack.c.bf16 %v66_v22, %v65_v21  ;;  %v63_v25 = vld [vmem:[#allocation5] sm:$0xff]  ;;  %v222_v28 = vld [vmem:[%s370_s3] ss:$0 sm:$0xff] }
  0x14   :  { %94 = vmatpush.bf16.msra.mxu0 %v87_v5  ;;  %v64_v26 = vpack.c.bf16 %v63_v25, %v62_v24 }
  0x18   :  { %95 = vmatpush.bf16.msra.mxu0 %v86_v8 }
  0x1c   :  { %96 = vmatpush.bf16.msra.mxu0 %v85_v11 }
  0x20   :  { %97 = vmatpush.bf16.msra.mxu0 %v84_v14 }
  0x24   :  { %98 = vmatpush.bf16.msra.mxu0 %v83_v17 }
  0x28   :  { %99 = vmatpush.bf16.msra.mxu0 %v82_v20 }
  0x2c   :  { %100 = vmatpush.bf16.msra.mxu0 %v81_v23 }
  0x2f   :  { %101 = vmatmul.bf16.vlgmr.msra.gmra.mxu0 %v64_v26 }
  0xac   :  { %v102_v27 = vpop.f32.mrf.mxu0 }
  0xad   :  { %v103_v32 = vadd.f32 %v222_v28, %v102_v27 }
  0xaf   :  { %v107_v33 = vmul.f32 %v103_v32, %v103_v32 }
  0xb4   :  { %v104_v29 = vpop.f32.mrf.mxu0 }
  0xb5   :  { %v105_v30 = vadd.f32 %v222_v28, %v104_v29 }
  0xb7   :  { %v108_v31 = vmul.f32 %v105_v30, %v105_v30 }
  0xb9   :  { %111 = vadd.xlane.f32.xlu0 %v108_v31 }
  0xc1   :  { %109 = vadd.xlane.f32.xlu0 %v107_v33 }
 0x12c   :  { %v112_v34 = vpop.xlane.xlu0 %111 }
 0x12d   :  { %v114_v35 = vadd.f32 1e-12, %v112_v34 }
 0x12f   :  { %223 = vrsqrt.f32 %v114_v35  ;;  %vm131_vm1 = vweird.f32 %v114_v35 }
 0x134   :  { %v110_v36 = vpop.xlane.xlu0 %109 }
 0x135   :  { %v224_v37 = vpop.eup %223  ;;  %v113_v38 = vadd.f32 1e-12, %v110_v36 }
 0x136   :  { %v126_v39 = vmul.f32 %v224_v37, %v114_v35  ;;  %vm132_vm0 = vweird.f32 %v224_v37 }
 0x137   :  { %225 = vrsqrt.f32 %v113_v38  ;;  %vm133_vm2 = vmor %vm131_vm1, %vm132_vm0  ;;  %vm121_vm4 = vweird.f32 %v113_v38 }
 0x138   :  { %v127_v40 = vmul.f32 %v224_v37, %v126_v39 }
 0x13a   :  { %v128_v41 = vmul.f32 0.5, %v127_v40 }
 0x13c   :  { %v129_v42 = vsub.f32 1.5, %v128_v41 }
 0x13d   :  { %v226_v43 = vpop.eup %225 }
 0x13e   :  { %v116_v44 = vmul.f32 %v226_v43, %v113_v38  ;;  %v130_v45 = vmul.f32 %v224_v37, %v129_v42  ;;  %vm122_vm3 = vweird.f32 %v226_v43 }
 0x13f   :  { %vm123_vm5 = vmor %vm121_vm4, %vm122_vm3 }
 0x140   :  { %v117_v46 = vmul.f32 %v226_v43, %v116_v44  ;;  %v134_v47 = vsel %vm133_vm2, %v224_v37, %v130_v45 }
 0x141   :  { %v136_v48 = vmul.f32 %v134_v47, %v105_v30 }
 0x142   :  { %v118_v49 = vmul.f32 0.5, %v117_v46 }
 0x143   :  { %v138_v50 = vpack.c.bf16 %v136_v48, %v136_v48 }
 0x144   :  { %v119_v51 = vsub.f32 1.5, %v118_v49 }
 0x145   :  { %146 = vmatpush.bf16.xpose.msra.mxu1 %v138_v50  ;;  %v153_v57 = vunpack.c.l.bf16 %v138_v50 }
 0x146   :  { %v120_v52 = vmul.f32 %v226_v43, %v119_v51 }
 0x148   :  { %v124_v53 = vsel %vm123_vm5, %v226_v43, %v120_v52 }
 0x149   :  { %v135_v54 = vmul.f32 %v124_v53, %v103_v32 }
 0x14b   :  { %v137_v55 = vpack.c.bf16 %v135_v54, %v135_v54 }
 0x14d   :  { %147 = vmatmul.bf16.vlgmr.msra.gmra.mxu1 %v137_v55  ;;  %v152_v56 = vunpack.c.l.bf16 %v137_v55 }
 0x14f   :  { %v154_v58 = vmul.f32 %v153_v57, %v152_v56 }
 0x151   :  { %155 = vadd.xlane.f32.xlu2 %v154_v58 }
 0x1c4   :  { %v156_v10 = vpop.xlane.xlu2 %155 }
 0x1c5   :  { %v213_v11 = vadd.f32 -0.2, %v156_v10 }
 0x1c7   :  { %v166_v14 = vmul.f32 20.0, %v213_v11 }
 0x1ca   :  { %v148_v62 = vpop.f32.mrf.mxu1 }
 0x1cb   :  { %v212_v63 = vadd.f32 -0.2, %v148_v62 }
 0x1cd   :  { %v163_v0 = vsel %vm161_vm6, %v212_v63, %v148_v62 }
 0x1ce   :  { %v164_v1 = vmul.f32 20.0, %v163_v0 }
 0x1d0   :  { %v168_v2 = vsel %vm167_vm7, %v164_v1, -inf }
 0x1d1   :  { %169 = vmax.xlane.f32.xlu1 %v168_v2 }
 0x1d2   :  { %v150_v3 = vpop.f32.mrf.mxu1 }
 0x244   :  { %v170_v4 = vpop.xlane.xlu1 %169 }
 0x245   :  { %v171_v5 = vsub.f32 %v164_v1, %v170_v4 }
 0x247   :  { %v172_v6 = vmul.f32 1.442695, %v171_v5 }
 0x249   :  { %227 = vpow2.f32 %v172_v6 }
 0x24f   :  { %v228_v7 = vpop.eup %227 }
 0x250   :  { %v174_v8 = vsel %vm167_vm7, %v228_v7, 0.0 }
 0x251   :  { %175 = vadd.xlane.f32.xlu1 %v174_v8 }
 0x2c4   :  { %v176_v9 = vpop.xlane.xlu1 %175 }
 0x2c5   :  { %229 = vlog2.f32 %v176_v9 }
 0x2cb   :  { %v230_v12 = vpop.eup %229 }
 0x2cc   :  { %v178_v13 = vmul.f32 0.6931472, %v230_v12 }
 0x2ce   :  { %v179_v15 = vadd.f32 %v178_v13, %v170_v4 }
 0x2d0   :  { %v180_v16 = vsub.f32 %v179_v15, %v166_v14 }
 0x2d2   :  { %v182_v17 = vsel %vm181_vm8, %v180_v16, 0.0 }
 0x2d3   :  { %183 = vadd.xlane.f32.xlu2 %v182_v17 }
 0x346   :  { %v184_v18 = vpop.xlane.xlu2 %183 }
 0x347   :  { %v185_v19 = vrot.slane %v184_v18, 4 }
 0x349   :  { %v186_v20 = vadd.f32 %v185_v19, %v184_v18 }
 0x34b   :  { %v187_v21 = vrot.slane %v186_v20, 2 }
 0x34d   :  { %v188_v22 = vadd.f32 %v187_v21, %v186_v20 }
 0x34f   :  { %v189_v23 = vrot.slane %v188_v22, 1 }
 0x351   :  { %v190_v24 = vadd.f32 %v189_v23, %v188_v22 }
 0x353   :  { %214 = vpush %v190_v24 }
 0x384   :  { %s215_s7 = spop %214 }
 0x385   :  { %s192_s8 = smul.f32 0.125, %s215_s7 }
 0x387   :  { %194 = sst [smem:[#allocation8]] %s192_s8 }
 0x388   :  { %203 = dma.smem_to_hbm %s326_s9, 16, %s201_s6, [#allocation4]  }
 0x389   :  { %319 = dma.done.wait [#allocation4], 16  }
 0x38a   :  { %320 = vsyncadd [#allocation4], 4294967280 }
 0x38b   :  { %208 = sfence }
 0x38c   :  { %209 = vsyncpa [#allocation3], 1 }
 0x38d   :  { %210 = vsyncpa [#allocation6], 1 }
 0x38e   :  { %211 = vsyncpa [#allocation4], 1 }

</bundles_post_ra>
